<compile_context>
chip_gen: v7x
topology: tpu7x:2x2x1
jax: 0.10.0
libtpu: 0.0.40
codegen_flags: <defaults>
</compile_context>

<pallas_src>
import functools

import jax
import jax.numpy as jnp
from jax.experimental import pallas as pl
from jax.experimental.pallas import tpu as pltpu


def pose_kernel(x_ref, w_ref, b_ref, o_ref, *, S, H):
    # x tile: [TB, S] f32 -> bf16 for the MXU (accumulation stays f32).
    x = x_ref[...].astype(jnp.bfloat16)

    # fc1 + relu (dropout = identity in eval mode)
    h = jnp.dot(x, w_ref[:S, :], preferred_element_type=jnp.float32)
    h = jnp.maximum(h + b_ref[0:1, :], 0.0)

    # fc2 + relu
    h = jnp.dot(h.astype(jnp.bfloat16), w_ref[S:S + H, :],
                preferred_element_type=jnp.float32)
    h = jnp.maximum(h + b_ref[1:2, :], 0.0)

    # fused head: columns = [trans0, trans1, 0, 0, 0, rot, <H-6 zero pad>]
    out = jnp.dot(h.astype(jnp.bfloat16), w_ref[S + H:, :],
                  preferred_element_type=jnp.float32)
    out = out + b_ref[2:3, :]

    # Force literal zeros in columns 2..4 (exact parity with torch.cat of zero
    # tensors, robust to NaN/Inf in the input).
    col = jax.lax.broadcasted_iota(jnp.int32, out.shape, 1)
    out = jnp.where((col >= 2) & (col < 5), 0.0, out)

    o_ref[...] = out[:, :6].astype(o_ref.dtype)


def _round_up(x, m):
    return ((x + m - 1) // m) * m


def pose_model_forward(state, params, *, tb=256):
    """state: [B, S] float32 -> [B, 6] float32 (eval-mode forward)."""
    w_pack, b_pack = params
    B, S = state.shape
    H = w_pack.shape[1]
    assert w_pack.shape[0] == S + 2 * H and b_pack.shape == (3, H)

    TB = min(tb, _round_up(B, 8))          # batch tile (rows per grid step)
    B_pad = _round_up(B, TB)
    if B_pad != B:
        state = jnp.pad(state, ((0, B_pad - B), (0, 0)))
    grid = (B_pad // TB,)

    kernel = functools.partial(pose_kernel, S=S, H=H)
    cost = pl.CostEstimate(
        flops=2 * B_pad * (S * H + H * H + H * H),
        transcendentals=0,
        bytes_accessed=(B_pad * S * 4 + w_pack.size * 2 + b_pack.size * 4
                        + B_pad * 6 * 4),
    )

    out = pl.pallas_call(
        kernel,
        out_shape=jax.ShapeDtypeStruct((B_pad, 6), jnp.float32),
        grid=grid,
        in_specs=[
            # batch-tiled activations: pipelined / double-buffered per step
            pl.BlockSpec((TB, S), lambda i: (i, 0)),
            # packed weights / biases: constant index_map -> loaded once,
            # VMEM-resident across the whole grid
            pl.BlockSpec(w_pack.shape, lambda i: (0, 0)),
            pl.BlockSpec(b_pack.shape, lambda i: (0, 0)),
        ],
        out_specs=pl.BlockSpec((TB, 6), lambda i: (i, 0)),
        compiler_params=pltpu.CompilerParams(
            dimension_semantics=("parallel",)),   # 2 TensorCores on v7x
        cost_estimate=cost,
    )(state, w_pack, b_pack)
    return out[:B]


def init_params(key, state_size, hidden_size):
    """Synthetic parameters matching PoseModel's layer shapes, packed for TPU."""
    assert hidden_size >= 6
    k1, k2, k3, k4, k5, k6, k7, k8 = jax.random.split(key, 8)
    s = 0.1
    w1 = s * jax.random.normal(k1, (state_size, hidden_size), jnp.float32)
    b1 = s * jax.random.normal(k2, (1, hidden_size), jnp.float32)
    w2 = s * jax.random.normal(k3, (hidden_size, hidden_size), jnp.float32)
    b2 = s * jax.random.normal(k4, (1, hidden_size), jnp.float32)
    w3_trans = s * jax.random.normal(k5, (hidden_size, 2), jnp.float32)
    b3_trans = s * jax.random.normal(k6, (1, 2), jnp.float32)
    w3_rot = s * jax.random.normal(k7, (hidden_size, 1), jnp.float32)
    b3_rot = s * jax.random.normal(k8, (1, 1), jnp.float32)

    # Fuse trans/rot heads + the cat'ed zero columns into one [H, 6] head, then
    # pad its columns to H so all three weight matrices share a lane width and
    # can be row-concatenated into a single bf16 slab (one DMA, MXU-native).
    wh = jnp.zeros((hidden_size, hidden_size), jnp.float32)
    wh = wh.at[:, 0:2].set(w3_trans).at[:, 5:6].set(w3_rot)
    bh = jnp.zeros((1, hidden_size), jnp.float32)
    bh = bh.at[:, 0:2].set(b3_trans).at[:, 5:6].set(b3_rot)

    w_pack = jnp.concatenate([w1, w2, wh], axis=0).astype(jnp.bfloat16)  # [S+2H, H]
    b_pack = jnp.concatenate([b1, b2, bh], axis=0)                       # [3, H] f32
    return (w_pack, b_pack)


def reference_forward(state, params):
    """Pure-JAX reference using the exact same (bf16) weights as the kernel."""
    w_pack, b_pack = params
    S = state.shape[1]
    H = w_pack.shape[1]
    w1, w2, wh = w_pack[:S], w_pack[S:S + H], w_pack[S + H:]
    b1, b2, bh = b_pack[0:1], b_pack[1:2], b_pack[2:3]
    h = jnp.dot(state.astype(jnp.bfloat16), w1,
                preferred_element_type=jnp.float32) + b1
    h = jnp.maximum(h, 0.0)
    h = jnp.dot(h.astype(jnp.bfloat16), w2,
                preferred_element_type=jnp.float32) + b2
    h = jnp.maximum(h, 0.0)
    out = jnp.dot(h.astype(jnp.bfloat16), wh,
                  preferred_element_type=jnp.float32) + bh
    out = out[:, :6]
    return out.at[:, 2:5].set(0.0)


if __name__ == "__main__":
    # Planner-scale batch through ONE pallas_call (amortizes launch overhead);
    # per-layer sizes stay small and consistent with the module.
    B, state_size, hidden_size = 512, 32, 64

    key = jax.random.PRNGKey(0)
    k_state, k_params = jax.random.split(key)
    state = jax.random.normal(k_state, (B, state_size), jnp.float32)
    params = init_params(k_params, state_size, hidden_size)

    out = pose_model_forward(state, params, tb=256)   # grid = (2,) batch tiles
    out = jax.block_until_ready(out)

    ref = reference_forward(state, params)
    assert out.shape == (B, 6), out.shape
    assert jnp.allclose(out, ref, atol=1e-4, rtol=1e-4), "mismatch vs reference"
    # columns 2,3,4 must be exactly zero (the cat'ed zero tensors)
    assert jnp.all(out[:, 2:5] == 0.0)

    print("KERNEL_OK")
</pallas_src>

<mosaic_0001>
module attributes {stable_mosaic.version = 11 : i64} {
  func.func @pose_kernel(%arg0: i32, %arg1: memref<256x32xf32, #tpu.memory_space<vmem>>, %arg2: memref<160x64xbf16, #tpu.memory_space<vmem>>, %arg3: memref<3x64xf32, #tpu.memory_space<vmem>>, %arg4: memref<256x6xf32, #tpu.memory_space<vmem>>) attributes {dimension_semantics = [#tpu.dimension_semantics<parallel>], iteration_bounds = array<i64: 2>, scalar_prefetch = 0 : i64, scratch_operands = 0 : i64, tpu.core_type = #tpu.core_type<tc>, window_params = [{transform_indices = @transform_0, window_bounds = array<i64: 256, 32>}, {pipeline_mode = #tpu.pipeline_mode<synchronous>, transform_indices = @transform_1, window_bounds = array<i64: 160, 64>}, {pipeline_mode = #tpu.pipeline_mode<synchronous>, transform_indices = @transform_2, window_bounds = array<i64: 3, 64>}, {transform_indices = @transform_3, window_bounds = array<i64: 256, 6>}]} {
    %c0 = arith.constant 0 : index
    %c0_0 = arith.constant 0 : index
    %0 = vector.load %arg1[%c0, %c0_0] : memref<256x32xf32, #tpu.memory_space<vmem>>, vector<256x32xf32>
    %1 = arith.truncf %0 : vector<256x32xf32> to vector<256x32xbf16>
    %c0_1 = arith.constant 0 : index
    %c0_2 = arith.constant 0 : index
    %2 = vector.load %arg2[%c0_1, %c0_2] : memref<160x64xbf16, #tpu.memory_space<vmem>>, vector<32x64xbf16>
    %cst = arith.constant dense<0.000000e+00> : vector<256x64xf32>
    %3 = tpu.matmul %1, %2, %cst {dimension_numbers = #tpu.dot_dimension_numbers<[1], [0], [0], [1], [0, 0, 1, 1], [], []>} : vector<256x32xbf16>, vector<32x64xbf16>, vector<256x64xf32> -> vector<256x64xf32>
    %c0_3 = arith.constant 0 : index
    %c0_4 = arith.constant 0 : index
    %4 = vector.load %arg3[%c0_3, %c0_4] : memref<3x64xf32, #tpu.memory_space<vmem>>, vector<1x64xf32>
    %5 = vector.broadcast %4 : vector<1x64xf32> to vector<256x64xf32>
    %6 = arith.addf %3, %5 : vector<256x64xf32>
    %cst_5 = arith.constant 0.000000e+00 : f32
    %7 = vector.broadcast %cst_5 : f32 to vector<256x64xf32>
    %8 = arith.maximumf %6, %7 : vector<256x64xf32>
    %9 = arith.truncf %8 : vector<256x64xf32> to vector<256x64xbf16>
    %c32 = arith.constant 32 : index
    %c0_6 = arith.constant 0 : index
    %10 = vector.load %arg2[%c32, %c0_6] : memref<160x64xbf16, #tpu.memory_space<vmem>>, vector<64x64xbf16>
    %cst_7 = arith.constant dense<0.000000e+00> : vector<256x64xf32>
    %11 = tpu.matmul %9, %10, %cst_7 {dimension_numbers = #tpu.dot_dimension_numbers<[1], [0], [0], [1], [0, 0, 1, 1], [], []>} : vector<256x64xbf16>, vector<64x64xbf16>, vector<256x64xf32> -> vector<256x64xf32>
    %c1 = arith.constant 1 : index
    %c0_8 = arith.constant 0 : index
    %12 = vector.load %arg3[%c1, %c0_8] : memref<3x64xf32, #tpu.memory_space<vmem>>, vector<1x64xf32>
    %13 = vector.broadcast %12 : vector<1x64xf32> to vector<256x64xf32>
    %14 = arith.addf %11, %13 : vector<256x64xf32>
    %cst_9 = arith.constant 0.000000e+00 : f32
    %15 = vector.broadcast %cst_9 : f32 to vector<256x64xf32>
    %16 = arith.maximumf %14, %15 : vector<256x64xf32>
    %17 = arith.truncf %16 : vector<256x64xf32> to vector<256x64xbf16>
    %c96 = arith.constant 96 : index
    %c0_10 = arith.constant 0 : index
    %18 = vector.load %arg2[%c96, %c0_10] : memref<160x64xbf16, #tpu.memory_space<vmem>>, vector<64x64xbf16>
    %cst_11 = arith.constant dense<0.000000e+00> : vector<256x64xf32>
    %19 = tpu.matmul %17, %18, %cst_11 {dimension_numbers = #tpu.dot_dimension_numbers<[1], [0], [0], [1], [0, 0, 1, 1], [], []>} : vector<256x64xbf16>, vector<64x64xbf16>, vector<256x64xf32> -> vector<256x64xf32>
    %c2 = arith.constant 2 : index
    %c0_12 = arith.constant 0 : index
    %20 = vector.load %arg3[%c2, %c0_12] : memref<3x64xf32, #tpu.memory_space<vmem>>, vector<1x64xf32>
    %21 = vector.broadcast %20 : vector<1x64xf32> to vector<256x64xf32>
    %22 = arith.addf %19, %21 : vector<256x64xf32>
    %23 = tpu.iota {dimensions = array<i32: 1>} : vector<256x64xi32>
    %c2_i32 = arith.constant 2 : i32
    %24 = vector.broadcast %c2_i32 : i32 to vector<256x64xi32>
    %25 = arith.cmpi sge, %23, %24 : vector<256x64xi32>
    %c5_i32 = arith.constant 5 : i32
    %26 = vector.broadcast %c5_i32 : i32 to vector<256x64xi32>
    %27 = arith.cmpi slt, %23, %26 : vector<256x64xi32>
    %28 = arith.andi %25, %27 : vector<256x64xi1>
    %cst_13 = arith.constant 0.000000e+00 : f32
    %29 = vector.broadcast %cst_13 : f32 to vector<256x64xf32>
    %30 = arith.select %28, %29, %22 : vector<256x64xi1>, vector<256x64xf32>
    %31 = vector.extract_strided_slice %30 {offsets = [0, 0], sizes = [256, 6], strides = [1, 1]} : vector<256x64xf32> to vector<256x6xf32>
    %c0_14 = arith.constant 0 : index
    %c0_15 = arith.constant 0 : index
    %32 = vector.load %arg4[%c0_14, %c0_15] : memref<256x6xf32, #tpu.memory_space<vmem>>, vector<256x6xf32>
    tpu.vector_store %arg4[%c0_14, %c0_15], %31 {strides = array<i32>} : memref<256x6xf32, #tpu.memory_space<vmem>>, vector<256x6xf32>,
    return
  }
  func.func @transform_0(%arg0: i32) -> (i32, i32) {
    %c0_i32 = arith.constant 0 : i32
    %c0_i32_0 = arith.constant 0 : i32
    return %arg0, %c0_i32 : i32, i32
  }
  func.func @transform_1(%arg0: i32) -> (i32, i32) {
    %c0_i32 = arith.constant 0 : i32
    %c0_i32_0 = arith.constant 0 : i32
    %c0_i32_1 = arith.constant 0 : i32
    return %c0_i32, %c0_i32_0 : i32, i32
  }
  func.func @transform_2(%arg0: i32) -> (i32, i32) {
    %c0_i32 = arith.constant 0 : i32
    %c0_i32_0 = arith.constant 0 : i32
    %c0_i32_1 = arith.constant 0 : i32
    return %c0_i32, %c0_i32_0 : i32, i32
  }
  func.func @transform_3(%arg0: i32) -> (i32, i32) {
    %c0_i32 = arith.constant 0 : i32
    %c0_i32_0 = arith.constant 0 : i32
    return %arg0, %c0_i32 : i32, i32
  }
}

</mosaic_0001>

<bundles_post_ra>
// kernel: tpu_custom_call.1
= control target key start
LH: loop header
LB: loop body
LE: loop exit
PB: predicated region body
PF: predicated region fallthrough
CT: control target
= control target key end

     0   :  { %s1465_s12 = smov 0   ;;  %s1852_s0 = inlined_call_operand.vmem [shape: f32[512,32], index: 0, kind: input, shape index: {}]   ;;  %s1853_s1 = inlined_call_operand.vmem [shape: bf16[160,64], index: 1, kind: input, shape index: {}]   ;;  %s1854_s2 = inlined_call_operand.vmem [shape: f32[3,64], index: 2, kind: input, shape index: {}]   ;;  %s1855_s3 = inlined_call_operand.vmem [shape: f32[512,6], index: 3, kind: output, shape index: {}]  }
   0x1 LB: > { %s1169_s13 = sadd.s32 4294967295, %s1443_s12   ;;  %p1173_p0 = scmp.ge.s32.totalorder %s1443_s12, 1  ;;  %s1443_s12 = sphi %s1465_s12, %s13_s12  }
   0x2   : > { %p138_p1 = scmp.lt.s32.totalorder %s1443_s12, 3 }
   0x4   : > { %p139_p2 = pnand %p1173_p0, %p138_p1 }
   0x5   : > { %v1427_v0 = vld [vmem:[%s1853_s1] sm:$0xff] (!%p139_p2)   ;;  %s1174_s16 = sshll.u32 (!%p139_p2), %s1169_s13, 5  ;;  %v1428_v1 = vld [vmem:[%s1853_s1 + $0x8] sm:$0xff] (!%p139_p2)   ;;  %v1429_v2 = vld [vmem:[%s1853_s1 + $0x10] sm:$0xff] (!%p139_p2)   ;;  %vm244_vm0 = vcmask (!%p139_p2), 261120   ;;  %vm539_vm1 = vcmask (!%p139_p2), 523264  }
   0x6   : > { %142 = sbr.rel (%p139_p2) target bundleno = 739 (0x2e3), region = 32  ;;  %p163_p3 = scmp.lt.s32.totalorder (!%p139_p2), %s1174_s16, 63  ;;  %1299 = vmatprep.subr.bf16.mxu0 (!%p139_p2), %v1427_v0  ;;  %1415 = vmatprep.subr.bf16.mxu1 (!%p139_p2), %v1427_v0  ;;  %v1430_v24 = vld [vmem:[%s1853_s1 + $0x18] sm:$0xff] (!%p139_p2)   ;;  %v1431_v30 = vld [vmem:[%s1853_s1 + $0x20] sm:$0xff] (!%p139_p2)   ;;  %v1432_v53 = vld [vmem:[%s1853_s1 + $0x28] sm:$0xff] (!%p139_p2)   ;;  %vm1080_vm5 = vcmask (!%p139_p2), 48128  }
   0x7   : > { %1300 = vmatpush3.bf16.msra.mxu0 (!%p139_p2), %v1427_v0  ;;  %1417 = vmatpush3.bf16.msra.mxu1 (!%p139_p2), %v1427_v0  ;;  %v1433_v54 = vld [vmem:[%s1853_s1 + $0x30] sm:$0xff] (!%p139_p2)   ;;  %v1434_v55 = vld [vmem:[%s1853_s1 + $0x38] sm:$0xff] (!%p139_p2)   ;;  %v1435_v56 = vld [vmem:[%s1853_s1 + $0x40] sm:$0xff] (!%p139_p2)  }
   0x8   : > { %1301 = vmatprep.subr.bf16.mxu0 (!%p139_p2), %v1428_v1  ;;  %1416 = vmatprep.subr.bf16.mxu1 (!%p139_p2), %v1428_v1  ;;  %v1561_v57 = vld [vmem:[%s1854_s2] ss:$0 sm:$0xff] (!%p139_p2) }
   0xb   : > { %1302 = vmatpush3.bf16.msra.mxu0 (!%p139_p2), %v1428_v1  ;;  %1418 = vmatpush3.bf16.msra.mxu1 (!%p139_p2), %v1428_v1 }
   0xc   : > { %1335 = vmatprep.subr.bf16.mxu1 (!%p139_p2), %v1429_v2  ;;  %1375 = vmatprep.subr.bf16.mxu0 (!%p139_p2), %v1433_v54 }
   0xd   : > { %s1859_s16 = smov (!%p163_p3, %s1174_s16), 63 }
   0xe   : > { %s1175_s21 = sshll.u32 %s1859_s16, 3 }
   0xf   : > { %s1490_s24 = scalar_lea.vmem %s1852_s0, %s1175_s21  ;;  %s1687_s23 = scalar_lea.vmem %s1855_s3, %s1175_s21 }
  0x10   : > { %v175_v3 = vld [vmem:[%s1490_s24] sm:$0xff]  ;;  %v176_v4 = vld [vmem:[%s1490_s24 + $0x8] sm:$0xff]  ;;  %v177_v5 = vld [vmem:[%s1490_s24 + $0x10] sm:$0xff] }
  0x11   : > { %v207_v6 = vpack.c.bf16 %v176_v4, %v175_v3  ;;  %v178_v7 = vld [vmem:[%s1490_s24 + $0x18] sm:$0xff]  ;;  %v179_v8 = vld [vmem:[%s1490_s24 + $0x20] sm:$0xff]  ;;  %v180_v9 = vld [vmem:[%s1490_s24 + $0x28] sm:$0xff] }
  0x12   : > { %v208_v10 = vpack.c.bf16 %v178_v7, %v177_v5  ;;  %v209_v11 = vpack.c.bf16 %v180_v9, %v179_v8  ;;  %v181_v12 = vld [vmem:[%s1490_s24 + $0x30] sm:$0xff]  ;;  %v182_v13 = vld [vmem:[%s1490_s24 + $0x38] sm:$0xff]  ;;  %v183_v14 = vld [vmem:[%s1490_s24 + $0x40] sm:$0xff] }
  0x13   : > { %1303 = vmatprep.mubr.msk.bf16.mxu0 %vm244_vm0, %v207_v6  ;;  %v184_v15 = vld [vmem:[%s1490_s24 + $0x48] sm:$0xff]  ;;  %v191_v16 = vld [vmem:[%s1490_s24 + $0x80] sm:$0xff]  ;;  %v193_v19 = vld [vmem:[%s1490_s24 + $0x90] sm:$0xff]  ;;  %v210_v25 = vpack.c.bf16 %v182_v13, %v181_v12 }
  0x14   : > { %1304 = vmatmul.mubr.msk.bf16.vlgmr.msra.gmra.mrb[0].mxu0 %vm244_vm0, %v208_v10  ;;  %v192_v17 = vld [vmem:[%s1490_s24 + $0x88] sm:$0xff]  ;;  %v194_v20 = vld [vmem:[%s1490_s24 + $0x98] sm:$0xff]  ;;  %v195_v21 = vld [vmem:[%s1490_s24 + $0xa0] sm:$0xff]  ;;  %v211_v27 = vpack.c.bf16 %v184_v15, %v183_v14 }
  0x15   : > { %1307 = vmatprep.mubr.msk.bf16.mxu0 %vm244_vm0, %v209_v11  ;;  %v215_v18 = vpack.c.bf16 %v192_v17, %v191_v16  ;;  %v216_v22 = vpack.c.bf16 %v194_v20, %v193_v19  ;;  %v196_v23 = vld [vmem:[%s1490_s24 + $0xa8] sm:$0xff]  ;;  %v197_v28 = vld [vmem:[%s1490_s24 + $0xb0] sm:$0xff]  ;;  %v198_v29 = vld [vmem:[%s1490_s24 + $0xb8] sm:$0xff]  ;;  %1376 = vmatpush3.bf16.msra.mxu0 %v1433_v54 }
  0x16   : > { %v217_v26 = vpack.c.bf16 %v196_v23, %v195_v21  ;;  %v199_v31 = vld [vmem:[%s1490_s24 + $0xc0] sm:$0xff]  ;;  %v200_v32 = vld [vmem:[%s1490_s24 + $0xc8] sm:$0xff]  ;;  %v185_v33 = vld [vmem:[%s1490_s24 + $0x50] sm:$0xff]  ;;  %v218_v35 = vpack.c.bf16 %v198_v29, %v197_v28  ;;  %1377 = vmatprep.subr.bf16.mxu0 %v1434_v55 }
  0x17   : > { %1319 = vmatprep.mubr.msk.bf16.mxu1 %vm244_vm0, %v215_v18  ;;  %v186_v34 = vld [vmem:[%s1490_s24 + $0x58] sm:$0xff]  ;;  %v187_v36 = vld [vmem:[%s1490_s24 + $0x60] sm:$0xff]  ;;  %v188_v37 = vld [vmem:[%s1490_s24 + $0x68] sm:$0xff]  ;;  %v219_v38 = vpack.c.bf16 %v200_v32, %v199_v31 }
  0x18   : > { %1320 = vmatmul.mubr.msk.bf16.vlgmr.msra.gmra.mrb[0].mxu1 %vm244_vm0, %v216_v22  ;;  %v212_v39 = vpack.c.bf16 %v186_v34, %v185_v33  ;;  %v213_v40 = vpack.c.bf16 %v188_v37, %v187_v36  ;;  %v201_v41 = vld [vmem:[%s1490_s24 + $0xd0] sm:$0xff]  ;;  %v202_v42 = vld [vmem:[%s1490_s24 + $0xd8] sm:$0xff]  ;;  %v203_v43 = vld [vmem:[%s1490_s24 + $0xe0] sm:$0xff] }
  0x19   : > { %1323 = vmatprep.mubr.msk.bf16.mxu1 %vm244_vm0, %v217_v26  ;;  %1336 = vmatpush3.bf16.msra.mxu1 %v1429_v2  ;;  %v204_v44 = vld [vmem:[%s1490_s24 + $0xe8] sm:$0xff]  ;;  %v189_v45 = vld [vmem:[%s1490_s24 + $0x70] sm:$0xff]  ;;  %v190_v46 = vld [vmem:[%s1490_s24 + $0x78] sm:$0xff]  ;;  %v220_v47 = vpack.c.bf16 %v202_v42, %v201_v41 }
  0x1a   : > { %1337 = vmatprep.subr.bf16.mxu1 %v1430_v24  ;;  %v221_v48 = vpack.c.bf16 %v204_v44, %v203_v43  ;;  %v214_v49 = vpack.c.bf16 %v190_v46, %v189_v45  ;;  %v205_v50 = vld [vmem:[%s1490_s24 + $0xf0] sm:$0xff]  ;;  %v206_v51 = vld [vmem:[%s1490_s24 + $0xf8] sm:$0xff]  ;;  %1378 = vmatpush3.bf16.msra.mxu0 %v1434_v55 }
  0x1b   : > { %v222_v52 = vpack.c.bf16 %v206_v51, %v205_v50  ;;  %1379 = vmatprep.subr.bf16.mxu0 %v1435_v56 }
  0x1c   : > { %1308 = vmatmul.mubr.msk.bf16.gmra.mrb[4].mxu0 %vm244_vm0, %v210_v25 }
  0x1d   : > { %1311 = vmatprep.mubr.msk.bf16.mxu0 %vm244_vm0, %v211_v27  ;;  %1338 = vmatpush3.bf16.msra.mxu1 %v1430_v24 }
  0x1e   : > { %1339 = vmatprep.subr.bf16.mxu1 %v1431_v30  ;;  %1380 = vmatpush3.bf16.msra.mxu0 %v1435_v56 }
  0x20   : > { %1324 = vmatmul.mubr.msk.bf16.gmra.mrb[4].mxu1 %vm244_vm0, %v218_v35 }
  0x21   : > { %1327 = vmatprep.mubr.msk.bf16.mxu1 %vm244_vm0, %v219_v38  ;;  %1340 = vmatpush3.bf16.msra.mxu1 %v1431_v30 }
  0x22   : > { %1341 = vmatprep.subr.bf16.mxu1 %v1432_v53 }
  0x24   : > { %1312 = vmatmul.mubr.msk.bf16.gmra.mrb[8].mxu0 %vm244_vm0, %v212_v39 }
  0x25   : > { %1315 = vmatprep.mubr.msk.bf16.mxu0 %vm244_vm0, %v213_v40  ;;  %1342 = vmatpush3.bf16.msra.mxu1 %v1432_v53 }
  0x28   : > { %1328 = vmatmul.mubr.msk.bf16.gmra.mrb[8].mxu1 %vm244_vm0, %v220_v47 }
  0x29   : > { %1331 = vmatprep.mubr.msk.bf16.mxu1 %vm244_vm0, %v221_v48 }
  0x2c   : > { %1316 = vmatmul.mubr.msk.bf16.gmra.mrb[12].mxu0 %vm244_vm0, %v214_v49 }
  0x30   : > { %1332 = vmatmul.mubr.msk.bf16.gmra.mrb[12].mxu1 %vm244_vm0, %v222_v52 }
  0xe7   : > { %v1305_v58 = vpop.f32.mrb[0].mxu0 }
  0xe8   : > { %v336_v59 = vadd.f32 %v1305_v58, %v1561_v57  ;;  %v327_v60 = vpop.f32.mrb[1].mxu0 }
  0xe9   : > { %v328_v61 = vadd.f32 %v1561_v57, %v327_v60  ;;  %v1306_v62 = vpop.f32.mrb[2].mxu0 }
  0xea   : > { %v339_v63 = vadd.f32 %v1306_v62, %v1561_v57  ;;  %v330_v0 = vpop.f32.mrb[3].mxu0  ;;  %v456_v2 = vmax.f32 %v336_v59, 0.0 }
  0xeb   : > { %v331_v1 = vadd.f32 %v1561_v57, %v330_v0  ;;  %v1321_v4 = vpop.f32.mrb[0].mxu1  ;;  %v454_v5 = vmax.f32 %v328_v61, 0.0 }
  0xec   : > { %v457_v3 = vmax.f32 %v339_v63, 0.0  ;;  %v400_v7 = vadd.f32 %v1321_v4, %v1561_v57  ;;  %v391_v8 = vpop.f32.mrb[1].mxu1 }
  0xed   : > { %v455_v6 = vmax.f32 %v331_v1, 0.0  ;;  %v392_v10 = vadd.f32 %v1561_v57, %v391_v8  ;;  %v1322_v11 = vpop.f32.mrb[2].mxu1 }
  0xee   : > { %v487_v9 = vpack.c.bf16 %v457_v3, %v456_v2  ;;  %v472_v14 = vmax.f32 %v400_v7, 0.0  ;;  %v403_v15 = vadd.f32 %v1322_v11, %v1561_v57  ;;  %v394_v16 = vpop.f32.mrb[3].mxu1 }
  0xef   : > { %v486_v12 = vpack.c.bf16 %v455_v6, %v454_v5  ;;  %v1309_v13 = vpop.f32.mrb[4].mxu0  ;;  %v470_v19 = vmax.f32 %v392_v10, 0.0  ;;  %v395_v20 = vadd.f32 %v1561_v57, %v394_v16 }
  0xf0   : > { %v352_v17 = vadd.f32 %v1309_v13, %v1561_v57  ;;  %v343_v18 = vpop.f32.mrb[5].mxu0  ;;  %v473_v23 = vmax.f32 %v403_v15, 0.0 }
  0xf1   : > { %v344_v21 = vadd.f32 %v1561_v57, %v343_v18  ;;  %v1310_v22 = vpop.f32.mrb[6].mxu0  ;;  %1343 = vmatprep.mubr.msk.bf16.mxu1 %vm539_vm1, %v486_v12  ;;  %v471_v26 = vmax.f32 %v395_v20, 0.0 }
  0xf2   : > { %v355_v24 = vadd.f32 %v1310_v22, %v1561_v57  ;;  %v346_v25 = vpop.f32.mrb[7].mxu0  ;;  %1344 = vmatmul.mubr.msk.bf16.vlgmr.msra.gmra.mrb[16].mxu1 %vm539_vm1, %v487_v9  ;;  %v1577_v28 = vpack.c.bf16 %v473_v23, %v472_v14  ;;  %v460_v29 = vmax.f32 %v352_v17, 0.0 }
  0xf3   : > { %v347_v27 = vadd.f32 %v1561_v57, %v346_v25  ;;  %v1579_v31 = vpack.c.bf16 %v471_v26, %v470_v19  ;;  %v1325_v32 = vpop.f32.mrb[4].mxu1  ;;  %v458_v33 = vmax.f32 %v344_v21, 0.0 }
  0xf4   : > { %v461_v30 = vmax.f32 %v355_v24, 0.0  ;;  %v416_v35 = vadd.f32 %v1325_v32, %v1561_v57  ;;  %v407_v36 = vpop.f32.mrb[5].mxu1 }
  0xf5   : > { %v459_v34 = vmax.f32 %v347_v27, 0.0  ;;  %v408_v38 = vadd.f32 %v1561_v57, %v407_v36  ;;  %v1326_v39 = vpop.f32.mrb[6].mxu1 }
  0xf6   : > { %v489_v37 = vpack.c.bf16 %v461_v30, %v460_v29  ;;  %v476_v42 = vmax.f32 %v416_v35, 0.0  ;;  %v419_v43 = vadd.f32 %v1326_v39, %v1561_v57  ;;  %v410_v44 = vpop.f32.mrb[7].mxu1 }
  0xf7   : > { %v488_v40 = vpack.c.bf16 %v459_v34, %v458_v33  ;;  %v1313_v41 = vpop.f32.mrb[8].mxu0  ;;  %v474_v47 = vmax.f32 %v408_v38, 0.0  ;;  %v411_v48 = vadd.f32 %v1561_v57, %v410_v44 }
  0xf8   : > { %v368_v45 = vadd.f32 %v1313_v41, %v1561_v57  ;;  %v359_v46 = vpop.f32.mrb[9].mxu0  ;;  %v477_v51 = vmax.f32 %v419_v43, 0.0 }
  0xf9   : > { %v360_v49 = vadd.f32 %v1561_v57, %v359_v46  ;;  %v1314_v50 = vpop.f32.mrb[10].mxu0  ;;  %1347 = vmatprep.mubr.msk.bf16.mxu1 %vm539_vm1, %v488_v40  ;;  %v475_v54 = vmax.f32 %v411_v48, 0.0 }
  0xfa   : > { %v371_v52 = vadd.f32 %v1314_v50, %v1561_v57  ;;  %v362_v53 = vpop.f32.mrb[11].mxu0  ;;  %1348 = vmatmul.mubr.msk.bf16.gmra.mrb[20].mxu1 %vm539_vm1, %v489_v37  ;;  %v497_v56 = vpack.c.bf16 %v477_v51, %v476_v42  ;;  %v464_v58 = vmax.f32 %v368_v45, 0.0 }
  0xfb   : > { %v363_v55 = vadd.f32 %v1561_v57, %v362_v53  ;;  %v496_v60 = vpack.c.bf16 %v475_v54, %v474_v47  ;;  %v1329_v61 = vpop.f32.mrb[8].mxu1  ;;  %v462_v62 = vmax.f32 %v360_v49, 0.0 }
  0xfc   : > { %v465_v59 = vmax.f32 %v371_v52, 0.0  ;;  %v432_v0 = vadd.f32 %v1329_v61, %v1561_v57  ;;  %v423_v1 = vpop.f32.mrb[9].mxu1 }
  0xfd   : > { %v463_v63 = vmax.f32 %v363_v55, 0.0  ;;  %v424_v3 = vadd.f32 %v1561_v57, %v423_v1  ;;  %v1330_v4 = vpop.f32.mrb[10].mxu1 }
  0xfe   : > { %v491_v2 = vpack.c.bf16 %v465_v59, %v464_v58  ;;  %v480_v7 = vmax.f32 %v432_v0, 0.0  ;;  %v435_v8 = vadd.f32 %v1330_v4, %v1561_v57  ;;  %v426_v9 = vpop.f32.mrb[11].mxu1 }
  0xff   : > { %v490_v5 = vpack.c.bf16 %v463_v63, %v462_v62  ;;  %v1317_v6 = vpop.f32.mrb[12].mxu0  ;;  %v478_v12 = vmax.f32 %v424_v3, 0.0  ;;  %v427_v13 = vadd.f32 %v1561_v57, %v426_v9 }
 0x100   : > { %v384_v10 = vadd.f32 %v1317_v6, %v1561_v57  ;;  %v375_v11 = vpop.f32.mrb[13].mxu0  ;;  %v481_v16 = vmax.f32 %v435_v8, 0.0 }
 0x101   : > { %v376_v14 = vadd.f32 %v1561_v57, %v375_v11  ;;  %v1318_v15 = vpop.f32.mrb[14].mxu0  ;;  %1351 = vmatprep.mubr.msk.bf16.mxu1 %vm539_vm1, %v490_v5  ;;  %v479_v19 = vmax.f32 %v427_v13, 0.0 }
 0x102   : > { %v387_v17 = vadd.f32 %v1318_v15, %v1561_v57  ;;  %v378_v18 = vpop.f32.mrb[15].mxu0  ;;  %1352 = vmatmul.mubr.msk.bf16.gmra.mrb[24].mxu1 %vm539_vm1, %v491_v2  ;;  %v499_v21 = vpack.c.bf16 %v481_v16, %v480_v7  ;;  %v468_v22 = vmax.f32 %v384_v10, 0.0 }
 0x103   : > { %v379_v20 = vadd.f32 %v1561_v57, %v378_v18  ;;  %v498_v24 = vpack.c.bf16 %v479_v19, %v478_v12  ;;  %v1333_v25 = vpop.f32.mrb[12].mxu1  ;;  %v466_v26 = vmax.f32 %v376_v14, 0.0 }
 0x104   : > { %v469_v23 = vmax.f32 %v387_v17, 0.0  ;;  %v448_v29 = vadd.f32 %v1333_v25, %v1561_v57  ;;  %v439_v30 = vpop.f32.mrb[13].mxu1 }
 0x105   : > { %v467_v27 = vmax.f32 %v379_v20, 0.0  ;;  %v440_v33 = vadd.f32 %v1561_v57, %v439_v30  ;;  %v1334_v34 = vpop.f32.mrb[14].mxu1 }
 0x106   : > { %v493_v32 = vpack.c.bf16 %v469_v23, %v468_v22  ;;  %v484_v36 = vmax.f32 %v448_v29, 0.0  ;;  %v451_v37 = vadd.f32 %v1334_v34, %v1561_v57  ;;  %v442_v38 = vpop.f32.mrb[15].mxu1 }
 0x107   : > { %v492_v35 = vpack.c.bf16 %v467_v27, %v466_v26  ;;  %v482_v39 = vmax.f32 %v440_v33, 0.0  ;;  %v443_v40 = vadd.f32 %v1561_v57, %v442_v38  ;;  %v1436_v57 = vld [vmem:[%s1853_s1 + $0x48] sm:$0xff]  }
 0x108   : > { %v485_v41 = vmax.f32 %v451_v37, 0.0  ;;  %1381 = vmatprep.subr.bf16.mxu0 %v1436_v57 }
 0x109   : > { %1355 = vmatprep.mubr.msk.bf16.mxu1 %vm539_vm1, %v492_v35  ;;  %v483_v42 = vmax.f32 %v443_v40, 0.0  ;;  %1382 = vmatpush3.bf16.msra.mxu0 %v1436_v57 }
 0x10a   : > { %1356 = vmatmul.mubr.msk.bf16.gmra.mrb[28].mxu1 %vm539_vm1, %v493_v32  ;;  %v501_v43 = vpack.c.bf16 %v485_v41, %v484_v36 }
 0x10b   : > { %1359 = vmatprep.mubr.msk.bf16.mxu1 %vm539_vm1, %v1579_v31  ;;  %v500_v44 = vpack.c.bf16 %v483_v42, %v482_v39 }
 0x112   : > { %1360 = vmatmul.mubr.msk.bf16.gmra.mrb[32].mxu1 %vm539_vm1, %v1577_v28  ;;  %v1623_v28 = vld [vmem:[%s1854_s2 + $0x1] ss:$0 sm:$0xff] }
 0x113   : > { %1363 = vmatprep.mubr.msk.bf16.mxu1 %vm539_vm1, %v496_v60 }
 0x11a   : > { %1364 = vmatmul.mubr.msk.bf16.gmra.mrb[36].mxu1 %vm539_vm1, %v497_v56 }
 0x11b   : > { %1367 = vmatprep.mubr.msk.bf16.mxu1 %vm539_vm1, %v498_v24 }
 0x122   : > { %1368 = vmatmul.mubr.msk.bf16.gmra.mrb[40].mxu1 %vm539_vm1, %v499_v21 }
 0x123   : > { %1371 = vmatprep.mubr.msk.bf16.mxu1 %vm539_vm1, %v500_v44 }
 0x12a   : > { %1372 = vmatmul.mubr.msk.bf16.gmra.mrb[44].mxu1 %vm539_vm1, %v501_v43 }
 0x1c5   : > { %v1345_v31 = vpop.f32.mrb[16].mxu1 }
 0x1c6   : > { %v631_v45 = vadd.f32 %v1345_v31, %v1623_v28  ;;  %v622_v46 = vpop.f32.mrb[17].mxu1 }
 0x1c7   : > { %v623_v47 = vadd.f32 %v1623_v28, %v622_v46  ;;  %v1346_v48 = vpop.f32.mrb[18].mxu1 }
 0x1c8   : > { %v634_v49 = vadd.f32 %v1346_v48, %v1623_v28  ;;  %v625_v50 = vpop.f32.mrb[19].mxu1  ;;  %v751_v52 = vmax.f32 %v631_v45, 0.0 }
 0x1c9   : > { %v626_v51 = vadd.f32 %v1623_v28, %v625_v50  ;;  %v749_v54 = vmax.f32 %v623_v47, 0.0 }
 0x1ca   : > { %v752_v53 = vmax.f32 %v634_v49, 0.0 }
 0x1cb   : > { %v750_v55 = vmax.f32 %v626_v51, 0.0 }
 0x1cc   : > { %v782_v56 = vpack.c.bf16 %v752_v53, %v751_v52 }
 0x1cd   : > { %v781_v58 = vpack.c.bf16 %v750_v55, %v749_v54  ;;  %v1349_v59 = vpop.f32.mrb[20].mxu1 }
 0x1ce   : > { %v647_v60 = vadd.f32 %v1349_v59, %v1623_v28  ;;  %v638_v61 = vpop.f32.mrb[21].mxu1 }
 0x1cf   : > { %v639_v62 = vadd.f32 %v1623_v28, %v638_v61  ;;  %v1350_v63 = vpop.f32.mrb[22].mxu1  ;;  %1383 = vmatprep.mubr.msk.bf16.mxu0 %vm539_vm1, %v781_v58 }
 0x1d0   : > { %v650_v0 = vadd.f32 %v1350_v63, %v1623_v28  ;;  %v641_v1 = vpop.f32.mrb[23].mxu1  ;;  %1384 = vmatmul.mubr.msk.bf16.vlgmr.msra.gmra.mrb[16].mxu0 %vm539_vm1, %v782_v56  ;;  %v755_v3 = vmax.f32 %v647_v60, 0.0 }
 0x1d1   : > { %v642_v2 = vadd.f32 %v1623_v28, %v641_v1  ;;  %v753_v5 = vmax.f32 %v639_v62, 0.0 }
 0x1d2   : > { %v756_v4 = vmax.f32 %v650_v0, 0.0 }
 0x1d3   : > { %v754_v6 = vmax.f32 %v642_v2, 0.0 }
 0x1d4   : > { %v784_v7 = vpack.c.bf16 %v756_v4, %v755_v3 }
 0x1d5   : > { %v783_v8 = vpack.c.bf16 %v754_v6, %v753_v5  ;;  %v1353_v9 = vpop.f32.mrb[24].mxu1 }
 0x1d6   : > { %v663_v10 = vadd.f32 %v1353_v9, %v1623_v28  ;;  %v654_v11 = vpop.f32.mrb[25].mxu1 }
 0x1d7   : > { %v655_v12 = vadd.f32 %v1623_v28, %v654_v11  ;;  %v1354_v13 = vpop.f32.mrb[26].mxu1  ;;  %1387 = vmatprep.mubr.msk.bf16.mxu0 %vm539_vm1, %v783_v8 }
 0x1d8   : > { %v666_v14 = vadd.f32 %v1354_v13, %v1623_v28  ;;  %v657_v15 = vpop.f32.mrb[27].mxu1  ;;  %1388 = vmatmul.mubr.msk.bf16.gmra.mrb[20].mxu0 %vm539_vm1, %v784_v7  ;;  %v759_v17 = vmax.f32 %v663_v10, 0.0 }
 0x1d9   : > { %v658_v16 = vadd.f32 %v1623_v28, %v657_v15  ;;  %v757_v19 = vmax.f32 %v655_v12, 0.0 }
 0x1da   : > { %v760_v18 = vmax.f32 %v666_v14, 0.0 }
 0x1db   : > { %v758_v20 = vmax.f32 %v658_v16, 0.0 }
 0x1dc   : > { %v786_v21 = vpack.c.bf16 %v760_v18, %v759_v17 }
 0x1dd   : > { %v785_v22 = vpack.c.bf16 %v758_v20, %v757_v19  ;;  %v1357_v23 = vpop.f32.mrb[28].mxu1 }
 0x1de   : > { %v679_v24 = vadd.f32 %v1357_v23, %v1623_v28  ;;  %v670_v25 = vpop.f32.mrb[29].mxu1 }
 0x1df   : > { %v671_v26 = vadd.f32 %v1623_v28, %v670_v25  ;;  %v1358_v27 = vpop.f32.mrb[30].mxu1  ;;  %1391 = vmatprep.mubr.msk.bf16.mxu0 %vm539_vm1, %v785_v22 }
 0x1e0   : > { %v682_v29 = vadd.f32 %v1358_v27, %v1623_v28  ;;  %v673_v30 = vpop.f32.mrb[31].mxu1  ;;  %1392 = vmatmul.mubr.msk.bf16.gmra.mrb[24].mxu0 %vm539_vm1, %v786_v21  ;;  %v763_v33 = vmax.f32 %v679_v24, 0.0 }
 0x1e1   : > { %v674_v32 = vadd.f32 %v1623_v28, %v673_v30  ;;  %v761_v35 = vmax.f32 %v671_v26, 0.0 }
 0x1e2   : > { %v764_v34 = vmax.f32 %v682_v29, 0.0 }
 0x1e3   : > { %v762_v36 = vmax.f32 %v674_v32, 0.0  ;;  %v1043_v32 = vlaneseq }
 0x1e4   : > { %v788_v37 = vpack.c.bf16 %v764_v34, %v763_v33  ;;  %v1676_v34 = vld [vmem:[%s1854_s2 + $0x2] ss:$0 sm:$0xff] }
 0x1e5   : > { %v787_v38 = vpack.c.bf16 %v762_v36, %v761_v35  ;;  %v1361_v39 = vpop.f32.mrb[32].mxu1  ;;  %v1044_v33 = vand.u32 127, %v1043_v32 }
 0x1e6   : > { %v695_v40 = vadd.f32 %v1361_v39, %v1623_v28  ;;  %v686_v41 = vpop.f32.mrb[33].mxu1 }
 0x1e7   : > { %v687_v42 = vadd.f32 %v1623_v28, %v686_v41  ;;  %v1362_v43 = vpop.f32.mrb[34].mxu1  ;;  %1395 = vmatprep.mubr.msk.bf16.mxu0 %vm539_vm1, %v787_v38  ;;  %vm1045_vm2 = vcmp.ge.s32.totalorder %v1044_v33, 2  ;;  %vm1046_vm3 = vcmp.lt.s32.totalorder %v1044_v33, 5 }
 0x1e8   : > { %v698_v44 = vadd.f32 %v1362_v43, %v1623_v28  ;;  %v689_v57 = vpop.f32.mrb[35].mxu1  ;;  %1396 = vmatmul.mubr.msk.bf16.gmra.mrb[28].mxu0 %vm539_vm1, %v788_v37  ;;  %v767_v45 = vmax.f32 %v695_v40, 0.0  ;;  %vm1678_vm4 = vmand %vm1045_vm2, %vm1046_vm3 }
 0x1e9   : > { %v690_v31 = vadd.f32 %v1623_v28, %v689_v57  ;;  %v765_v47 = vmax.f32 %v687_v42, 0.0 }
 0x1ea   : > { %v768_v46 = vmax.f32 %v698_v44, 0.0 }
 0x1eb   : > { %v766_v48 = vmax.f32 %v690_v31, 0.0 }
 0x1ec   : > { %v790_v49 = vpack.c.bf16 %v768_v46, %v767_v45 }
 0x1ed   : > { %v789_v50 = vpack.c.bf16 %v766_v48, %v765_v47  ;;  %v1365_v51 = vpop.f32.mrb[36].mxu1 }
 0x1ee   : > { %v711_v52 = vadd.f32 %v1365_v51, %v1623_v28  ;;  %v702_v53 = vpop.f32.mrb[37].mxu1 }
 0x1ef   : > { %v703_v54 = vadd.f32 %v1623_v28, %v702_v53  ;;  %v1366_v55 = vpop.f32.mrb[38].mxu1  ;;  %1399 = vmatprep.mubr.msk.bf16.mxu0 %vm539_vm1, %v789_v50 }
 0x1f0   : > { %v714_v56 = vadd.f32 %v1366_v55, %v1623_v28  ;;  %v705_v58 = vpop.f32.mrb[39].mxu1  ;;  %1400 = vmatmul.mubr.msk.bf16.gmra.mrb[32].mxu0 %vm539_vm1, %v790_v49  ;;  %v771_v60 = vmax.f32 %v711_v52, 0.0 }
 0x1f1   : > { %v706_v59 = vadd.f32 %v1623_v28, %v705_v58  ;;  %v769_v62 = vmax.f32 %v703_v54, 0.0 }
 0x1f2   : > { %v772_v61 = vmax.f32 %v714_v56, 0.0 }
 0x1f3   : > { %v770_v63 = vmax.f32 %v706_v59, 0.0 }
 0x1f4   : > { %v792_v0 = vpack.c.bf16 %v772_v61, %v771_v60 }
 0x1f5   : > { %v791_v1 = vpack.c.bf16 %v770_v63, %v769_v62  ;;  %v1369_v2 = vpop.f32.mrb[40].mxu1 }
 0x1f6   : > { %v727_v3 = vadd.f32 %v1369_v2, %v1623_v28  ;;  %v718_v4 = vpop.f32.mrb[41].mxu1 }
 0x1f7   : > { %v719_v5 = vadd.f32 %v1623_v28, %v718_v4  ;;  %v1370_v6 = vpop.f32.mrb[42].mxu1  ;;  %1403 = vmatprep.mubr.msk.bf16.mxu0 %vm539_vm1, %v791_v1 }
 0x1f8   : > { %v730_v7 = vadd.f32 %v1370_v6, %v1623_v28  ;;  %v721_v8 = vpop.f32.mrb[43].mxu1  ;;  %1404 = vmatmul.mubr.msk.bf16.gmra.mrb[36].mxu0 %vm539_vm1, %v792_v0  ;;  %v775_v10 = vmax.f32 %v727_v3, 0.0 }
 0x1f9   : > { %v722_v9 = vadd.f32 %v1623_v28, %v721_v8  ;;  %v773_v12 = vmax.f32 %v719_v5, 0.0 }
 0x1fa   : > { %v776_v11 = vmax.f32 %v730_v7, 0.0 }
 0x1fb   : > { %v774_v13 = vmax.f32 %v722_v9, 0.0 }
 0x1fc   : > { %v794_v14 = vpack.c.bf16 %v776_v11, %v775_v10 }
 0x1fd   : > { %v793_v15 = vpack.c.bf16 %v774_v13, %v773_v12  ;;  %v1373_v16 = vpop.f32.mrb[44].mxu1 }
 0x1fe   : > { %v743_v17 = vadd.f32 %v1373_v16, %v1623_v28  ;;  %v734_v18 = vpop.f32.mrb[45].mxu1 }
 0x1ff   : > { %v735_v19 = vadd.f32 %v1623_v28, %v734_v18  ;;  %v1374_v20 = vpop.f32.mrb[46].mxu1  ;;  %1407 = vmatprep.mubr.msk.bf16.mxu0 %vm539_vm1, %v793_v15 }
 0x200   : > { %v746_v21 = vadd.f32 %v1374_v20, %v1623_v28  ;;  %v737_v22 = vpop.f32.mrb[47].mxu1  ;;  %1408 = vmatmul.mubr.msk.bf16.gmra.mrb[40].mxu0 %vm539_vm1, %v794_v14  ;;  %v779_v24 = vmax.f32 %v743_v17, 0.0 }
 0x201   : > { %v738_v23 = vadd.f32 %v1623_v28, %v737_v22  ;;  %v777_v26 = vmax.f32 %v735_v19, 0.0 }
 0x202   : > { %v780_v25 = vmax.f32 %v746_v21, 0.0 }
 0x203   : > { %v778_v27 = vmax.f32 %v738_v23, 0.0 }
 0x204   : > { %v796_v29 = vpack.c.bf16 %v780_v25, %v779_v24 }
 0x205   : > { %v795_v30 = vpack.c.bf16 %v778_v27, %v777_v26 }
 0x207   : > { %1411 = vmatprep.mubr.msk.bf16.mxu0 %vm539_vm1, %v795_v30 }
 0x208   : > { %1412 = vmatmul.mubr.msk.bf16.gmra.mrb[44].mxu0 %vm539_vm1, %v796_v29 }
 0x2a3   : > { %v1385_v28 = vpop.f32.mrb[16].mxu0 }
 0x2a4   : > { %v925_v36 = vadd.f32 %v1385_v28, %v1676_v34  ;;  %v916_v37 = vpop.f32.mrb[17].mxu0 }
 0x2a5   : > { %v917_v38 = vadd.f32 %v1676_v34, %v916_v37  ;;  %v1386_v39 = vpop.f32.mrb[18].mxu0 }
 0x2a6   : > { %v1050_v40 = vsel %vm1678_vm4, 0.0, %v925_v36  ;;  %v928_v41 = vadd.f32 %v1386_v39, %v1676_v34  ;;  %v919_v42 = vpop.f32.mrb[19].mxu0 }
 0x2a7   : > { %1083 = vst.msk [vmem:[%s1687_s23 + $0x10] sm:$0xff] %vm1080_vm5, %v1050_v40  ;;  %v1048_v43 = vsel %vm1678_vm4, 0.0, %v917_v38  ;;  %v920_v44 = vadd.f32 %v1676_v34, %v919_v42 }
 0x2a8   : > { %1081 = vst.msk [vmem:[%s1687_s23] sm:$0xff] %vm1080_vm5, %v1048_v43  ;;  %v1051_v57 = vsel %vm1678_vm4, 0.0, %v928_v41 }
 0x2a9   : > { %1084 = vst.msk [vmem:[%s1687_s23 + $0x18] sm:$0xff] %vm1080_vm5, %v1051_v57  ;;  %v1049_v31 = vsel %vm1678_vm4, 0.0, %v920_v44 }
 0x2aa   : > { %1082 = vst.msk [vmem:[%s1687_s23 + $0x8] sm:$0xff] %vm1080_vm5, %v1049_v31 }
 0x2ab   : > { %v1389_v45 = vpop.f32.mrb[20].mxu0 }
 0x2ac   : > { %v941_v46 = vadd.f32 %v1389_v45, %v1676_v34  ;;  %v932_v47 = vpop.f32.mrb[21].mxu0 }
 0x2ad   : > { %v933_v48 = vadd.f32 %v1676_v34, %v932_v47  ;;  %v1390_v49 = vpop.f32.mrb[22].mxu0 }
 0x2ae   : > { %v1054_v50 = vsel %vm1678_vm4, 0.0, %v941_v46  ;;  %v944_v51 = vadd.f32 %v1390_v49, %v1676_v34  ;;  %v935_v52 = vpop.f32.mrb[23].mxu0 }
 0x2af   : > { %1087 = vst.msk [vmem:[%s1687_s23 + $0x30] sm:$0xff] %vm1080_vm5, %v1054_v50  ;;  %v1052_v53 = vsel %vm1678_vm4, 0.0, %v933_v48  ;;  %v936_v54 = vadd.f32 %v1676_v34, %v935_v52 }
 0x2b0   : > { %1085 = vst.msk [vmem:[%s1687_s23 + $0x20] sm:$0xff] %vm1080_vm5, %v1052_v53  ;;  %v1055_v55 = vsel %vm1678_vm4, 0.0, %v944_v51 }
 0x2b1   : > { %1088 = vst.msk [vmem:[%s1687_s23 + $0x38] sm:$0xff] %vm1080_vm5, %v1055_v55  ;;  %v1053_v56 = vsel %vm1678_vm4, 0.0, %v936_v54 }
 0x2b2   : > { %1086 = vst.msk [vmem:[%s1687_s23 + $0x28] sm:$0xff] %vm1080_vm5, %v1053_v56 }
 0x2b3   : > { %v1393_v58 = vpop.f32.mrb[24].mxu0 }
 0x2b4   : > { %v957_v59 = vadd.f32 %v1393_v58, %v1676_v34  ;;  %v948_v60 = vpop.f32.mrb[25].mxu0 }
 0x2b5   : > { %v949_v61 = vadd.f32 %v1676_v34, %v948_v60  ;;  %v1394_v62 = vpop.f32.mrb[26].mxu0 }
 0x2b6   : > { %v1058_v63 = vsel %vm1678_vm4, 0.0, %v957_v59  ;;  %v960_v0 = vadd.f32 %v1394_v62, %v1676_v34  ;;  %v951_v1 = vpop.f32.mrb[27].mxu0 }
 0x2b7   : > { %1091 = vst.msk [vmem:[%s1687_s23 + $0x50] sm:$0xff] %vm1080_vm5, %v1058_v63  ;;  %v1056_v2 = vsel %vm1678_vm4, 0.0, %v949_v61  ;;  %v952_v3 = vadd.f32 %v1676_v34, %v951_v1 }
 0x2b8   : > { %1089 = vst.msk [vmem:[%s1687_s23 + $0x40] sm:$0xff] %vm1080_vm5, %v1056_v2  ;;  %v1059_v4 = vsel %vm1678_vm4, 0.0, %v960_v0 }
 0x2b9   : > { %1092 = vst.msk [vmem:[%s1687_s23 + $0x58] sm:$0xff] %vm1080_vm5, %v1059_v4  ;;  %v1057_v5 = vsel %vm1678_vm4, 0.0, %v952_v3 }
 0x2ba   : > { %1090 = vst.msk [vmem:[%s1687_s23 + $0x48] sm:$0xff] %vm1080_vm5, %v1057_v5 }
 0x2bb   : > { %v1397_v6 = vpop.f32.mrb[28].mxu0 }
 0x2bc   : > { %v973_v7 = vadd.f32 %v1397_v6, %v1676_v34  ;;  %v964_v8 = vpop.f32.mrb[29].mxu0 }
 0x2bd   : > { %v965_v9 = vadd.f32 %v1676_v34, %v964_v8  ;;  %v1398_v10 = vpop.f32.mrb[30].mxu0 }
 0x2be   : > { %v1062_v11 = vsel %vm1678_vm4, 0.0, %v973_v7  ;;  %v976_v12 = vadd.f32 %v1398_v10, %v1676_v34  ;;  %v967_v13 = vpop.f32.mrb[31].mxu0 }
 0x2bf   : > { %1095 = vst.msk [vmem:[%s1687_s23 + $0x70] sm:$0xff] %vm1080_vm5, %v1062_v11  ;;  %v1060_v14 = vsel %vm1678_vm4, 0.0, %v965_v9  ;;  %v968_v15 = vadd.f32 %v1676_v34, %v967_v13 }
 0x2c0   : > { %1093 = vst.msk [vmem:[%s1687_s23 + $0x60] sm:$0xff] %vm1080_vm5, %v1060_v14  ;;  %v1063_v16 = vsel %vm1678_vm4, 0.0, %v976_v12 }
 0x2c1   : > { %1096 = vst.msk [vmem:[%s1687_s23 + $0x78] sm:$0xff] %vm1080_vm5, %v1063_v16  ;;  %v1061_v17 = vsel %vm1678_vm4, 0.0, %v968_v15 }
 0x2c2   : > { %1094 = vst.msk [vmem:[%s1687_s23 + $0x68] sm:$0xff] %vm1080_vm5, %v1061_v17 }
 0x2c3   : > { %v1401_v18 = vpop.f32.mrb[32].mxu0 }
 0x2c4   : > { %v989_v19 = vadd.f32 %v1401_v18, %v1676_v34  ;;  %v980_v20 = vpop.f32.mrb[33].mxu0 }
 0x2c5   : > { %v981_v21 = vadd.f32 %v1676_v34, %v980_v20  ;;  %v1402_v22 = vpop.f32.mrb[34].mxu0 }
 0x2c6   : > { %v1066_v23 = vsel %vm1678_vm4, 0.0, %v989_v19  ;;  %v992_v24 = vadd.f32 %v1402_v22, %v1676_v34  ;;  %v983_v25 = vpop.f32.mrb[35].mxu0 }
 0x2c7   : > { %1099 = vst.msk [vmem:[%s1687_s23 + $0x90] sm:$0xff] %vm1080_vm5, %v1066_v23  ;;  %v1064_v26 = vsel %vm1678_vm4, 0.0, %v981_v21  ;;  %v984_v27 = vadd.f32 %v1676_v34, %v983_v25 }
 0x2c8   : > { %1097 = vst.msk [vmem:[%s1687_s23 + $0x80] sm:$0xff] %vm1080_vm5, %v1064_v26  ;;  %v1067_v29 = vsel %vm1678_vm4, 0.0, %v992_v24 }
 0x2c9   : > { %1100 = vst.msk [vmem:[%s1687_s23 + $0x98] sm:$0xff] %vm1080_vm5, %v1067_v29  ;;  %v1065_v30 = vsel %vm1678_vm4, 0.0, %v984_v27 }
 0x2ca   : > { %1098 = vst.msk [vmem:[%s1687_s23 + $0x88] sm:$0xff] %vm1080_vm5, %v1065_v30 }
 0x2cb   : > { %v1405_v32 = vpop.f32.mrb[36].mxu0 }
 0x2cc   : > { %v1005_v33 = vadd.f32 %v1405_v32, %v1676_v34  ;;  %v996_v28 = vpop.f32.mrb[37].mxu0 }
 0x2cd   : > { %v997_v36 = vadd.f32 %v1676_v34, %v996_v28  ;;  %v1406_v37 = vpop.f32.mrb[38].mxu0 }
 0x2ce   : > { %v1070_v38 = vsel %vm1678_vm4, 0.0, %v1005_v33  ;;  %v1008_v39 = vadd.f32 %v1406_v37, %v1676_v34  ;;  %v999_v40 = vpop.f32.mrb[39].mxu0 }
 0x2cf   : > { %1103 = vst.msk [vmem:[%s1687_s23 + $0xb0] sm:$0xff] %vm1080_vm5, %v1070_v38  ;;  %v1068_v41 = vsel %vm1678_vm4, 0.0, %v997_v36  ;;  %v1000_v42 = vadd.f32 %v1676_v34, %v999_v40 }
 0x2d0   : > { %1101 = vst.msk [vmem:[%s1687_s23 + $0xa0] sm:$0xff] %vm1080_vm5, %v1068_v41  ;;  %v1071_v43 = vsel %vm1678_vm4, 0.0, %v1008_v39 }
 0x2d1   : > { %1104 = vst.msk [vmem:[%s1687_s23 + $0xb8] sm:$0xff] %vm1080_vm5, %v1071_v43  ;;  %v1069_v44 = vsel %vm1678_vm4, 0.0, %v1000_v42 }
 0x2d2   : > { %1102 = vst.msk [vmem:[%s1687_s23 + $0xa8] sm:$0xff] %vm1080_vm5, %v1069_v44 }
 0x2d3   : > { %v1409_v57 = vpop.f32.mrb[40].mxu0 }
 0x2d4   : > { %v1021_v31 = vadd.f32 %v1409_v57, %v1676_v34  ;;  %v1012_v45 = vpop.f32.mrb[41].mxu0 }
 0x2d5   : > { %v1013_v46 = vadd.f32 %v1676_v34, %v1012_v45  ;;  %v1410_v47 = vpop.f32.mrb[42].mxu0 }
 0x2d6   : > { %v1074_v48 = vsel %vm1678_vm4, 0.0, %v1021_v31  ;;  %v1024_v49 = vadd.f32 %v1410_v47, %v1676_v34  ;;  %v1015_v50 = vpop.f32.mrb[43].mxu0 }
 0x2d7   : > { %1107 = vst.msk [vmem:[%s1687_s23 + $0xd0] sm:$0xff] %vm1080_vm5, %v1074_v48  ;;  %v1072_v51 = vsel %vm1678_vm4, 0.0, %v1013_v46  ;;  %v1016_v52 = vadd.f32 %v1676_v34, %v1015_v50 }
 0x2d8   : > { %1105 = vst.msk [vmem:[%s1687_s23 + $0xc0] sm:$0xff] %vm1080_vm5, %v1072_v51  ;;  %v1075_v53 = vsel %vm1678_vm4, 0.0, %v1024_v49 }
 0x2d9   : > { %1108 = vst.msk [vmem:[%s1687_s23 + $0xd8] sm:$0xff] %vm1080_vm5, %v1075_v53  ;;  %v1073_v54 = vsel %vm1678_vm4, 0.0, %v1016_v52 }
 0x2da   : > { %1106 = vst.msk [vmem:[%s1687_s23 + $0xc8] sm:$0xff] %vm1080_vm5, %v1073_v54 }
 0x2db   : > { %v1413_v55 = vpop.f32.mrb[44].mxu0 }
 0x2dc   : > { %v1037_v56 = vadd.f32 %v1413_v55, %v1676_v34  ;;  %v1028_v58 = vpop.f32.mrb[45].mxu0 }
 0x2dd   : > { %v1029_v59 = vadd.f32 %v1676_v34, %v1028_v58  ;;  %v1414_v60 = vpop.f32.mrb[46].mxu0 }
 0x2de   : > { %v1078_v61 = vsel %vm1678_vm4, 0.0, %v1037_v56  ;;  %v1040_v62 = vadd.f32 %v1414_v60, %v1676_v34  ;;  %v1031_v63 = vpop.f32.mrb[47].mxu0 }
 0x2df   : > { %1111 = vst.msk [vmem:[%s1687_s23 + $0xf0] sm:$0xff] %vm1080_vm5, %v1078_v61  ;;  %v1076_v0 = vsel %vm1678_vm4, 0.0, %v1029_v59  ;;  %v1032_v1 = vadd.f32 %v1676_v34, %v1031_v63 }
 0x2e0   : > { %1109 = vst.msk [vmem:[%s1687_s23 + $0xe0] sm:$0xff] %vm1080_vm5, %v1076_v0  ;;  %v1079_v2 = vsel %vm1678_vm4, 0.0, %v1040_v62 }
 0x2e1   : > { %1112 = vst.msk [vmem:[%s1687_s23 + $0xf8] sm:$0xff] %vm1080_vm5, %v1079_v2  ;;  %v1077_v3 = vsel %vm1678_vm4, 0.0, %v1032_v1 }
 0x2e2   : > { %1110 = vst.msk [vmem:[%s1687_s23 + $0xe8] sm:$0xff] %vm1080_vm5, %v1077_v3 }
 0x2e3 PF: > { %s13_s12 = sadd.s32 1, %s1443_s12  }
 0x2e4   : > { %p10_p4 = scmp.ge.s32.totalorder %s13_s12, 4  }
 0x2e6   :  { %12 = sbr.rel (!%p10_p4) target bundleno = 1 (0x1), region = 62 }

</bundles_post_ra>
